<compile_context>
chip_gen: v7x
topology: tpu7x:2x2x1
jax: 0.10.0
libtpu: 0.0.40
codegen_flags: <defaults>
</compile_context>

<pallas_src>
import functools

import jax
import jax.numpy as jnp
from jax.experimental import pallas as pl
from jax.experimental.pallas import tpu as pltpu


def _mcc_weight_kernel(logits_ref, w_ref, *, inv_temperature):
    # One (TB, C) batch tile; class axis is the lane (last) axis.
    x = logits_ref[...].astype(jnp.float32) * inv_temperature

    # Numerically-stable softmax over the class axis.
    x_max = jnp.max(x, axis=1, keepdims=True)
    e = jnp.exp(x - x_max)
    denom = jnp.sum(e, axis=1, keepdims=True)                 # (TB, 1)
    p = e * pl.reciprocal(denom, approx=False)                # softmax probs

    # entropy(predictions): H = -sum(p * log(p + 1e-5), dim=1)
    H = -jnp.sum(p * jnp.log(p + 1e-5), axis=1)               # (TB,)

    # Unnormalized entropy weight; global normalization happens in the wrapper.
    w = 1.0 + jnp.exp(-H)                                     # (TB,)

    # Lane-dense store: batch lives on the lane axis of a (1, TB) block.
    w_ref[...] = w[None, :].astype(w_ref.dtype)


def mcc_entropy_weight(logits: jax.Array, temperature: float = 2.5,
                       block_rows: int = 512) -> jax.Array:
    """Pallas implementation of MinimumClassConfusionLoss.forward.

    Args:
      logits: (B, C) array (f32 or bf16).
    Returns:
      (B, 1) float32 array of normalized entropy weights.
    """
    B, C = logits.shape

    if B <= block_rows:
        # Single block: round the sublane dim up to a multiple of 8.
        TB = max(8, -(-B // 8) * 8)
        B_pad = TB
    else:
        # Multi-block: TB must be a multiple of 128 so the (1, TB) lane-dense
        # output block satisfies the lane-tiling constraint.
        TB = block_rows
        assert TB % 128 == 0, "block_rows must be a multiple of 128"
        B_pad = -(-B // TB) * TB
    n_blocks = B_pad // TB

    x = logits
    if B_pad != B:
        # Zero-padded rows give a uniform softmax -> finite weights; they are
        # sliced off before the global normalization, so results are unaffected.
        x = jnp.pad(x, ((0, B_pad - B), (0, 0)))

    kernel = functools.partial(
        _mcc_weight_kernel, inv_temperature=1.0 / float(temperature)
    )

    w_unnorm = pl.pallas_call(
        kernel,
        out_shape=jax.ShapeDtypeStruct((1, B_pad), jnp.float32),
        grid=(n_blocks,),
        in_specs=[pl.BlockSpec((TB, C), lambda i: (i, 0))],
        out_specs=pl.BlockSpec((1, TB), lambda i: (0, i)),
        compiler_params=pltpu.CompilerParams(
            dimension_semantics=("parallel",),
            vmem_limit_bytes=32 * 1024 * 1024,
        ),
    )(x)

    # Global normalization (cross-block reduction) hoisted out of the kernel.
    w = w_unnorm[0, :B]
    w = (B * w) / jnp.sum(w)
    return w[:, None].astype(jnp.float32)


def _reference(logits: jax.Array, temperature: float = 2.5) -> jax.Array:
    """Pure-JAX reference mirroring the PyTorch module."""
    B, _ = logits.shape
    p = jax.nn.softmax(logits.astype(jnp.float32) / temperature, axis=1)
    H = -jnp.sum(p * jnp.log(p + 1e-5), axis=1)
    w = 1.0 + jnp.exp(-H)
    w = (B * w / jnp.sum(w))[:, None]
    return w


if __name__ == "__main__":
    key = jax.random.PRNGKey(0)
    B, C = 8, 32  # small (batch, num_classes) logits
    logits = jax.random.normal(key, (B, C), dtype=jnp.float32)

    out = mcc_entropy_weight(logits, temperature=2.5)
    jax.block_until_ready(out)

    ref = _reference(logits, temperature=2.5)
    assert out.shape == (B, 1)
    assert jnp.allclose(out, ref, atol=1e-5, rtol=1e-5), (out, ref)

    # Also exercise a multi-block, padded, bf16 case to cover the tiled path.
    B2, C2 = 1000, 257
    logits2 = jax.random.normal(jax.random.PRNGKey(1), (B2, C2), dtype=jnp.bfloat16)
    out2 = mcc_entropy_weight(logits2, temperature=2.5, block_rows=512)
    jax.block_until_ready(out2)
    ref2 = _reference(logits2.astype(jnp.float32), temperature=2.5)
    assert out2.shape == (B2, 1)
    assert jnp.allclose(out2, ref2, atol=5e-3, rtol=5e-3)

    print("KERNEL_OK")
</pallas_src>

<mosaic_0001>
module attributes {stable_mosaic.version = 11 : i64} {
  func.func @_mcc_weight_kernel(%arg0: i32, %arg1: memref<8x32xf32, #tpu.memory_space<vmem>>, %arg2: memref<1x8xf32, #tpu.memory_space<vmem>>) attributes {dimension_semantics = [#tpu.dimension_semantics<parallel>], iteration_bounds = array<i64: 1>, scalar_prefetch = 0 : i64, scratch_operands = 0 : i64, tpu.core_type = #tpu.core_type<tc>, window_params = [{transform_indices = @transform_0, window_bounds = array<i64: 8, 32>}, {transform_indices = @transform_1, window_bounds = array<i64: 1, 8>}]} {
    %c0 = arith.constant 0 : index
    %c0_0 = arith.constant 0 : index
    %0 = vector.load %arg1[%c0, %c0_0] : memref<8x32xf32, #tpu.memory_space<vmem>>, vector<8x32xf32>
    %cst = arith.constant 4.000000e-01 : f32
    %1 = vector.broadcast %cst : f32 to vector<8x32xf32>
    %2 = arith.mulf %0, %1 : vector<8x32xf32>
    %cst_1 = arith.constant dense<0xFF800000> : vector<8xf32>
    %3 = vector.multi_reduction <maximumf>, %2, %cst_1 [1] : vector<8x32xf32> to vector<8xf32>
    %4 = vector.shape_cast %3 : vector<8xf32> to vector<8x1xf32>
    %5 = vector.broadcast %4 : vector<8x1xf32> to vector<8x32xf32>
    %6 = arith.subf %2, %5 : vector<8x32xf32>
    %7 = math.exp %6 : vector<8x32xf32>
    %cst_2 = arith.constant dense<0.000000e+00> : vector<8xf32>
    %8 = vector.multi_reduction <add>, %7, %cst_2 [1] : vector<8x32xf32> to vector<8xf32>
    %9 = vector.shape_cast %8 : vector<8xf32> to vector<8x1xf32>
    %10 = tpu.reciprocal %9 : vector<8x1xf32> -> vector<8x1xf32>
    %11 = vector.broadcast %10 : vector<8x1xf32> to vector<8x32xf32>
    %12 = arith.mulf %7, %11 : vector<8x32xf32>
    %cst_3 = arith.constant 9.99999974E-6 : f32
    %13 = vector.broadcast %cst_3 : f32 to vector<8x32xf32>
    %14 = arith.addf %12, %13 : vector<8x32xf32>
    %15 = math.log %14 : vector<8x32xf32>
    %16 = arith.mulf %12, %15 : vector<8x32xf32>
    %cst_4 = arith.constant dense<0.000000e+00> : vector<8xf32>
    %17 = vector.multi_reduction <add>, %16, %cst_4 [1] : vector<8x32xf32> to vector<8xf32>
    %cst_5 = arith.constant 0.000000e+00 : f32
    %18 = vector.broadcast %cst_5 : f32 to vector<8xf32>
    %19 = arith.subf %18, %17 : vector<8xf32>
    %cst_6 = arith.constant 0.000000e+00 : f32
    %20 = vector.broadcast %cst_6 : f32 to vector<8xf32>
    %21 = arith.subf %20, %19 : vector<8xf32>
    %22 = math.exp %21 : vector<8xf32>
    %cst_7 = arith.constant 1.000000e+00 : f32
    %23 = vector.broadcast %cst_7 : f32 to vector<8xf32>
    %24 = arith.addf %23, %22 : vector<8xf32>
    %25 = vector.shape_cast %24 : vector<8xf32> to vector<1x8xf32>
    %c0_8 = arith.constant 0 : index
    %c0_9 = arith.constant 0 : index
    %26 = vector.load %arg2[%c0_8, %c0_9] : memref<1x8xf32, #tpu.memory_space<vmem>>, vector<1x8xf32>
    tpu.vector_store %arg2[%c0_8, %c0_9], %25 {strides = array<i32>} : memref<1x8xf32, #tpu.memory_space<vmem>>, vector<1x8xf32>,
    return
  }
  func.func @transform_0(%arg0: i32) -> (i32, i32) {
    %c0_i32 = arith.constant 0 : i32
    %c0_i32_0 = arith.constant 0 : i32
    return %arg0, %c0_i32 : i32, i32
  }
  func.func @transform_1(%arg0: i32) -> (i32, i32) {
    %c0_i32 = arith.constant 0 : i32
    %c0_i32_0 = arith.constant 0 : i32
    return %c0_i32, %arg0 : i32, i32
  }
}

</mosaic_0001>

<bundles_post_ra>
// kernel: tpu_custom_call.1
= control target key start
LH: loop header
LB: loop body
LE: loop exit
PB: predicated region body
PF: predicated region fallthrough
CT: control target
= control target key end

     0   :  { %6 = vsyncpa [#allocation3], 0  ;;  %s169_s0 = inlined_call_operand.hbm [shape: f32[8,32], index: 0, kind: input, shape index: {}]   ;;  %s170_s1 = inlined_call_operand.hbm [shape: f32[1,8], index: 1, kind: output, shape index: {}]  }
   0x1   :  { %7 = vsyncpa [#allocation4], 0  ;;  %s130_s6 = smov [#allocation2]   ;;  %s82_s10 = scalar_lea.hbm %s169_s0, 128 }
   0x2   :  { %s14_s7 = sshll.u32 %s130_s6, 4  ;;  %p83_p0 = scmp.ne.s32.totalorder %s169_s0, %s82_s10  ;;  %s15_s7 = int_to_ptr.vmem [resolvable:$true] %s14_s7 }
   0x3   :  { %p86_p1 = scmp.lt.u32.totalorder %s82_s10, %s169_s0 }
   0x5   :  { %p88_p2 = pnand %p86_p1, %p83_p0 }
   0x7   :  { %91 = shalt.err (!%p88_p2)
}
   0x8   :  { %s92_s15 = scalar_lea.vmem %s15_s7, 128  ;;  %p97_p4 = scmp.lt.s32.totalorder %s15_s7, %s15_s7 }
   0x9   :  { %p93_p3 = scmp.ne.s32.totalorder %s15_s7, %s92_s15  ;;  %p98_p5 = scmp.lt.s32.totalorder %s92_s15, %s92_s15 }
   0xb   :  { %p99_p6 = por %p98_p5, %p97_p4 }
   0xd   :  { %p100_p7 = pnand %p99_p6, %p93_p3 }
   0xf   :  { %103 = shalt.err (!%p100_p7)
}
  0x10   :  { %17 = dma.hbm_to_vmem [thread:$0]  %s169_s0, 128, %s15_s7, [#allocation3]  }
  0x11   :  { %126 = dma.done.wait [#allocation3], 128  }
  0x12   :  { %127 = vsyncadd [#allocation3], 4294967168  ;;  %v21_v0 = vld [vmem:[#allocation2] sm:$0xff]  ;;  %vm23_vm0 = vcmask 261120   ;;  %v48_v20 = vlaneseq  ;;  %s131_s0 = smov [#allocation5]   ;;  %vm55_vm1 = vcmask 57344  }
  0x13   :  { %v22_v1 = vmul.f32 0.4, %v21_v0  ;;  %s63_s18 = sshll.u32 %s131_s0, 4  ;;  %s64_s18 = int_to_ptr.vmem [resolvable:$true] %s63_s18 }
  0x14   :  { %v49_v21 = vand.u32 127, %v48_v20  ;;  %v51_v22 = vshrl.u32 %v48_v20, 7  ;;  %s104_s19 = scalar_lea.vmem %s64_s18, 16  ;;  %s108_s20 = scalar_lea.vmem %s64_s18, 32 }
  0x15   :  { %v24_v2 = vsel %vm23_vm0, %v22_v1, -inf  ;;  %p105_p8 = scmp.ne.s32.totalorder %s64_s18, %s104_s19  ;;  %p109_p9 = scmp.lt.s32.totalorder %s64_s18, %s64_s18 }
  0x16   :  { %25 = vmax.xlane.f32.xlu0 %v24_v2  ;;  %v52_v23 = vsub.s32 %v49_v21, %v51_v22  ;;  %p110_p10 = scmp.lt.s32.totalorder %s108_s20, %s104_s19 }
  0x18   :  { %p111_p11 = por %p110_p10, %p109_p9 }
  0x1a   :  { %p112_p12 = pnand %p111_p11, %p105_p8 }
  0xa3   :  { %v26_v3 = vpop.xlane.xlu0 %25 }
  0xa4   :  { %v27_v4 = vsub.f32 %v22_v1, %v26_v3 }
  0xa6   :  { %v28_v5 = vmul.f32 1.442695, %v27_v4 }
  0xa8   :  { %74 = vpow2.f32 %v28_v5 }
  0xb2   :  { %v75_v6 = vpop.eup %74 }
  0xb3   :  { %v30_v7 = vsel %vm23_vm0, %v75_v6, 0.0 }
  0xb4   :  { %31 = vadd.xlane.f32.xlu0 %v30_v7 }
 0x141   :  { %v32_v8 = vpop.xlane.xlu0 %31 }
 0x142   :  { %76 = vrcp.f32 %v32_v8 }
 0x14c   :  { %v77_v9 = vpop.eup %76 }
 0x14d   :  { %v34_v10 = vmul.f32 %v77_v9, %v75_v6 }
 0x14f   :  { %v35_v11 = vadd.f32 1e-05, %v34_v10 }
 0x151   :  { %78 = vlog2.f32 %v35_v11 }
 0x15b   :  { %v79_v12 = vpop.eup %78 }
 0x15c   :  { %v37_v13 = vmul.f32 0.6931472, %v79_v12 }
 0x15e   :  { %v38_v14 = vmul.f32 %v37_v13, %v34_v10 }
 0x160   :  { %v39_v15 = vsel %vm23_vm0, %v38_v14, 0.0 }
 0x161   :  { %40 = vadd.xlane.f32.xlu1 %v39_v15 }
 0x1ee   :  { %v41_v16 = vpop.xlane.xlu1 %40 }
 0x1ef   :  { %v42_v17 = vsub.f32 0.0, %v41_v16 }
 0x1f1   :  { %v43_v18 = vsub.f32 0.0, %v42_v17 }
 0x1f3   :  { %v44_v19 = vmul.f32 1.442695, %v43_v18 }
 0x1f5   :  { %80 = vpow2.f32 %v44_v19 }
 0x1ff   :  { %v81_v24 = vpop.eup %80 }
 0x200   :  { %v46_v25 = vadd.f32 1.0, %v81_v24 }
 0x202   :  { %v53_v26 = vrot.slane %v46_v25, %v52_v23 }
 0x204   :  { %56 = vst.msk [vmem:[#allocation5] sm:$0x1] %vm55_vm1, %v53_v26 }
 0x205   :  { %115 = shalt.err (!%p112_p12)
}
 0x206   :  { %s116_s23 = scalar_lea.hbm %s170_s1, 16 }
 0x207   :  { %p117_p13 = scmp.ne.s32.totalorder %s170_s1, %s116_s23  ;;  %p120_p0 = scmp.lt.u32.totalorder %s116_s23, %s170_s1 }
 0x209   :  { %p122_p1 = pnand %p120_p0, %p117_p13 }
 0x20b   :  { %125 = shalt.err (!%p122_p1)
}
 0x20c   :  { %66 = dma.vmem_to_hbm [thread:$0]  %s64_s18, 16, %s170_s1, [#allocation4]  }
 0x20d   :  { %128 = dma.done.wait [#allocation4], 16  }
 0x20e   :  { %129 = vsyncadd [#allocation4], 4294967280 }
 0x20f   :  { %70 = vsyncpa [#allocation3], 1 }
 0x210   :  { %71 = vsyncpa [#allocation4], 1 }

</bundles_post_ra>
